<compile_context>
chip_gen: v5e
topology: v5e:2x2
jax: 0.10.0
libtpu: 0.0.40
codegen_flags: <defaults>
</compile_context>

<pallas_src>
import numpy as np
import jax
import jax.numpy as jnp
from jax import lax
from jax.experimental import pallas as pl
from jax.experimental.pallas import tpu as pltpu

BN_EPS = 1e-5


def _round_up(x, m):
    return (x + m - 1) // m * m


def _choose_tm(m, cin, cout, in_bytes):
    """M-tile size: multiple of 16 rows, a few hundred rows, modest VMEM."""
    tm = min(512, _round_up(m, 16))
    budget = 8 * 1024 * 1024  # double-buffered taps + resident f32 y tile
    while tm > 128 and tm * (2 * cin * in_bytes + 8 * cout) > budget:
        tm //= 2
    return _round_up(max(tm, 16), 16)


# ----------------------------- Pallas kernels ------------------------------- #
def _conv_stats_kernel(t_ref, w_ref, y_ref, sum_ref, sq_ref):
    """Pass 1: conv as 9 accumulating matmuls + per-tile BN partial stats.

    grid = (m_tiles, 9); axis 0 ("parallel") tiles M = N*Ho*Wo, axis 1
    ("arbitrary") is the 3x3-tap reduction.
      t_ref   : (1, tm, Cin)   tap-k rows for this M tile
      w_ref   : (1, Cin, Cout) tap-k weight slice
      y_ref   : (tm, Cout)     f32 conv output tile (accumulator, resident over k)
      sum_ref : (1, 1, Cout)   per-tile, per-channel sum of y
      sq_ref  : (1, 1, Cout)   per-tile, per-channel sum of y*y
    """
    k = pl.program_id(1)

    @pl.when(k == 0)
    def _():
        y_ref[...] = jnp.zeros_like(y_ref)

    y_ref[...] += jnp.dot(t_ref[0], w_ref[0],
                          preferred_element_type=jnp.float32)

    @pl.when(k == pl.num_programs(1) - 1)
    def _():
        y = y_ref[...]
        sum_ref[...] = jnp.sum(y, axis=0, keepdims=True)[None]
        sq_ref[...] = jnp.sum(y * y, axis=0, keepdims=True)[None]


def _bn_relu_kernel(y_ref, scale_ref, shift_ref, o_ref):
    """Pass 2: per-channel affine (folded BN) + ReLU over M tiles."""
    o_ref[...] = jnp.maximum(
        y_ref[...] * scale_ref[...] + shift_ref[...], 0.0).astype(o_ref.dtype)


# ------------------------------- stage wrapper ------------------------------- #
def conv_bn_relu_stage(x_nhwc, w_taps, gamma, beta, *, compute_dtype=jnp.float32):
    """One extraFeats stage on an NHWC input; returns NHWC output (f32)."""
    n, h, w, cin = x_nhwc.shape
    cout = w_taps.shape[-1]
    ho = (h - 1) // 2 + 1
    wo = (w - 1) // 2 + 1
    m = n * ho * wo

    # Cheap XLA glue: 9 stride-2 tap views reshaped to (M, Cin), tap-major.
    xp = jnp.pad(x_nhwc, ((0, 0), (1, 1), (1, 1), (0, 0)))
    taps = []
    for kh in range(3):
        for kw in range(3):
            taps.append(xp[:, kh:kh + 2 * ho:2, kw:kw + 2 * wo:2, :]
                        .reshape(m, cin))
    taps = jnp.stack(taps, axis=0)                       # (9, M, Cin)

    in_bytes = jnp.dtype(compute_dtype).itemsize
    tm = _choose_tm(m, cin, cout, in_bytes)
    m_pad = _round_up(m, tm)
    m_tiles = m_pad // tm
    if m_pad != m:
        # Zero-padded rows produce exactly-zero conv outputs (no bias), so they
        # contribute nothing to the BN sums; the true M is used in finalize.
        taps = jnp.pad(taps, ((0, 0), (0, m_pad - m), (0, 0)))
    taps = taps.astype(compute_dtype)
    w_k = w_taps.astype(compute_dtype)                   # (9, Cin, Cout)

    cparams = pltpu.CompilerParams(
        dimension_semantics=("parallel", "arbitrary"),
        vmem_limit_bytes=32 * 1024 * 1024)

    y, bn_sum, bn_sq = pl.pallas_call(
        _conv_stats_kernel,
        out_shape=(
            jax.ShapeDtypeStruct((m_pad, cout), jnp.float32),
            jax.ShapeDtypeStruct((m_tiles, 1, cout), jnp.float32),
            jax.ShapeDtypeStruct((m_tiles, 1, cout), jnp.float32),
        ),
        grid=(m_tiles, 9),
        in_specs=[
            pl.BlockSpec((1, tm, cin), lambda i, k: (k, i, 0)),
            pl.BlockSpec((1, cin, cout), lambda i, k: (k, 0, 0)),
        ],
        out_specs=(
            pl.BlockSpec((tm, cout), lambda i, k: (i, 0)),
            pl.BlockSpec((1, 1, cout), lambda i, k: (i, 0, 0)),
            pl.BlockSpec((1, 1, cout), lambda i, k: (i, 0, 0)),
        ),
        compiler_params=cparams,
    )(taps, w_k)

    # Finalize BN batch statistics (tiny, Cout-wide) and fold gamma/beta.
    mean = jnp.sum(bn_sum, axis=0) / m                   # (1, Cout)
    mean_sq = jnp.sum(bn_sq, axis=0) / m
    var = jnp.maximum(mean_sq - mean * mean, 0.0)        # biased variance
    scale = gamma * lax.rsqrt(var + BN_EPS)
    shift = beta - mean * scale
    # NOTE: the conv bias cancels exactly in training-mode BN, so it is omitted.

    z = pl.pallas_call(
        _bn_relu_kernel,
        out_shape=jax.ShapeDtypeStruct((m_pad, cout), jnp.float32),
        grid=(m_tiles,),
        in_specs=[
            pl.BlockSpec((tm, cout), lambda i: (i, 0)),
            pl.BlockSpec((1, cout), lambda i: (0, 0)),
            pl.BlockSpec((1, cout), lambda i: (0, 0)),
        ],
        out_specs=pl.BlockSpec((tm, cout), lambda i: (i, 0)),
        compiler_params=pltpu.CompilerParams(
            dimension_semantics=("parallel",),
            vmem_limit_bytes=32 * 1024 * 1024),
    )(y, scale, shift)

    return z[:m].reshape(n, ho, wo, cout)


# -------------------------- parameter construction -------------------------- #
def init_extra_feats_params(cfg, key):
    """Mirror extraFeats.__init__/_initialize_weights deterministically."""
    params = []
    last_c = None
    for name, v in cfg.items():
        if name.startswith("extra"):
            cin, cout = last_c, v
            key, kw = jax.random.split(key)
            # nn.init.xavier_normal_: std = sqrt(2 / (fan_in + fan_out))
            std = (2.0 / (cin * 9 + cout * 9)) ** 0.5
            w_oihw = std * jax.random.normal(kw, (cout, cin, 3, 3), jnp.float32)
            # Precompute the matmul operand once: OIHW -> (kh,kw,Cin,Cout) -> (9,Cin,Cout)
            w_taps = jnp.transpose(w_oihw, (2, 3, 1, 0)).reshape(9, cin, cout)
            params.append(dict(
                w=w_oihw,                                 # for the reference path
                w_taps=w_taps,
                b=jnp.zeros((1, cout), jnp.float32),      # zero-init; cancels in BN
                gamma=jnp.ones((1, cout), jnp.float32),
                beta=jnp.zeros((1, cout), jnp.float32)))
        last_c = v
    return params


def extra_feats_forward(x_nchw, params, *, compute_dtype=jnp.float32):
    """extraFeats.forward: returns list of per-stage outputs (NCHW)."""
    x = jnp.transpose(x_nchw, (0, 2, 3, 1))  # NCHW -> NHWC once; chain in NHWC
    outs_nhwc = []
    for p in params:
        x = conv_bn_relu_stage(x, p["w_taps"], p["gamma"], p["beta"],
                               compute_dtype=compute_dtype)
        outs_nhwc.append(x)
    # Convert to NCHW only for the returned list (PyTorch convention).
    return [jnp.transpose(o, (0, 3, 1, 2)) for o in outs_nhwc]


# ------------------------------ pure-JAX reference --------------------------- #
def _reference_forward(x_nchw, params):
    x = x_nchw
    outs = []
    for p in params:
        y = lax.conv_general_dilated(
            x, p["w"], window_strides=(2, 2), padding=((1, 1), (1, 1)),
            dimension_numbers=("NCHW", "OIHW", "NCHW"))
        y = y + p["b"].reshape(1, -1, 1, 1)
        mean = jnp.mean(y, axis=(0, 2, 3), keepdims=True)
        var = jnp.mean(jnp.square(y - mean), axis=(0, 2, 3), keepdims=True)
        y = (y - mean) / jnp.sqrt(var + BN_EPS)
        y = y * p["gamma"].reshape(1, -1, 1, 1) + p["beta"].reshape(1, -1, 1, 1)
        x = jnp.maximum(y, 0.0)
        outs.append(x)
    return outs


# ----------------------------------- main ------------------------------------ #
if __name__ == "__main__":
    # cfg: first entry sets the input channel count, 'extra*' entries add stages.
    cfg = {"base": 4, "extra1": 8, "extra2": 16}

    key = jax.random.PRNGKey(0)
    key, kx = jax.random.split(key)
    x = jax.random.normal(kx, (2, 4, 16, 16), jnp.float32)  # NCHW

    params = init_extra_feats_params(cfg, key)

    fwd_f32 = jax.jit(
        lambda xx, pp: extra_feats_forward(xx, pp, compute_dtype=jnp.float32))
    fwd_bf16 = jax.jit(
        lambda xx, pp: extra_feats_forward(xx, pp, compute_dtype=jnp.bfloat16))

    outs = fwd_f32(x, params)
    outs = [jax.block_until_ready(o) for o in outs]

    # shapes: stage1 -> (2, 8, 8, 8), stage2 -> (2, 16, 4, 4)
    assert outs[0].shape == (2, 8, 8, 8) and outs[1].shape == (2, 16, 4, 4)

    refs = _reference_forward(x, params)
    for got, ref in zip(outs, refs):
        np.testing.assert_allclose(np.asarray(got), np.asarray(ref),
                                   rtol=1e-2, atol=1e-2)

    # bf16 MXU-input path (f32 accumulation, f32 BN/ReLU epilogue): loose check.
    outs_bf16 = [jax.block_until_ready(o) for o in fwd_bf16(x, params)]
    for got, ref in zip(outs_bf16, refs):
        np.testing.assert_allclose(np.asarray(got), np.asarray(ref),
                                   rtol=1e-1, atol=1e-1)

    print("KERNEL_OK")
</pallas_src>

<mosaic_0001>
module attributes {stable_mosaic.version = 11 : i64} {
  func.func @_conv_stats_kernel(%arg0: i32, %arg1: i32, %arg2: memref<1x128x4xf32, #tpu.memory_space<vmem>>, %arg3: memref<1x4x8xf32, #tpu.memory_space<vmem>>, %arg4: memref<128x8xf32, #tpu.memory_space<vmem>>, %arg5: memref<1x1x8xf32, #tpu.memory_space<vmem>>, %arg6: memref<1x1x8xf32, #tpu.memory_space<vmem>>) attributes {dimension_semantics = [#tpu.dimension_semantics<parallel>, #tpu.dimension_semantics<arbitrary>], iteration_bounds = array<i64: 1, 9>, scalar_prefetch = 0 : i64, scratch_operands = 0 : i64, tpu.core_type = #tpu.core_type<tc>, window_params = [{transform_indices = @transform_0, window_bounds = array<i64: 1, 128, 4>}, {transform_indices = @transform_1, window_bounds = array<i64: 1, 4, 8>}, {transform_indices = @transform_2, window_bounds = array<i64: 128, 8>}, {transform_indices = @transform_3, window_bounds = array<i64: 1, 1, 8>}, {transform_indices = @transform_4, window_bounds = array<i64: 1, 1, 8>}]} {
    %c0_i32 = arith.constant 0 : i32
    %0 = arith.cmpi eq, %arg1, %c0_i32 : i32
    %1 = arith.extui %0 : i1 to i32
    %c0_i32_0 = arith.constant 0 : i32
    %2 = arith.cmpi ne, %1, %c0_i32_0 : i32
    scf.if %2 {
      %cst_11 = arith.constant 0.000000e+00 : f32
      %14 = vector.broadcast %cst_11 : f32 to vector<128x8xf32>
      %c0_12 = arith.constant 0 : index
      %c0_13 = arith.constant 0 : index
      %15 = vector.load %arg4[%c0_12, %c0_13] : memref<128x8xf32, #tpu.memory_space<vmem>>, vector<128x8xf32>
      tpu.vector_store %arg4[%c0_12, %c0_13], %14 {strides = array<i32>} : memref<128x8xf32, #tpu.memory_space<vmem>>, vector<128x8xf32>,
    } else {
    }
    %c0 = arith.constant 0 : index
    %c0_1 = arith.constant 0 : index
    %3 = vector.load %arg4[%c0, %c0_1] : memref<128x8xf32, #tpu.memory_space<vmem>>, vector<128x8xf32>
    %c0_2 = arith.constant 0 : index
    %c0_3 = arith.constant 0 : index
    %c0_4 = arith.constant 0 : index
    %4 = vector.load %arg2[%c0_2, %c0_3, %c0_4] : memref<1x128x4xf32, #tpu.memory_space<vmem>>, vector<1x128x4xf32>
    %5 = vector.shape_cast %4 : vector<1x128x4xf32> to vector<128x4xf32>
    %c0_5 = arith.constant 0 : index
    %c0_6 = arith.constant 0 : index
    %c0_7 = arith.constant 0 : index
    %6 = vector.load %arg3[%c0_5, %c0_6, %c0_7] : memref<1x4x8xf32, #tpu.memory_space<vmem>>, vector<1x4x8xf32>
    %7 = vector.shape_cast %6 : vector<1x4x8xf32> to vector<4x8xf32>
    %cst = arith.constant dense<0.000000e+00> : vector<128x8xf32>
    %8 = tpu.matmul %5, %7, %cst {dimension_numbers = #tpu.dot_dimension_numbers<[1], [0], [0], [1], [0, 0, 1, 1], [], []>} : vector<128x4xf32>, vector<4x8xf32>, vector<128x8xf32> -> vector<128x8xf32>
    %9 = arith.addf %3, %8 : vector<128x8xf32>
    %c0_8 = arith.constant 0 : index
    %c0_9 = arith.constant 0 : index
    %10 = vector.load %arg4[%c0_8, %c0_9] : memref<128x8xf32, #tpu.memory_space<vmem>>, vector<128x8xf32>
    tpu.vector_store %arg4[%c0_8, %c0_9], %9 {strides = array<i32>} : memref<128x8xf32, #tpu.memory_space<vmem>>, vector<128x8xf32>,
    %c8_i32 = arith.constant 8 : i32
    %11 = arith.cmpi eq, %arg1, %c8_i32 : i32
    %12 = arith.extui %11 : i1 to i32
    %c0_i32_10 = arith.constant 0 : i32
    %13 = arith.cmpi ne, %12, %c0_i32_10 : i32
    scf.if %13 {
      %c0_11 = arith.constant 0 : index
      %c0_12 = arith.constant 0 : index
      %14 = vector.load %arg4[%c0_11, %c0_12] : memref<128x8xf32, #tpu.memory_space<vmem>>, vector<128x8xf32>
      %cst_13 = arith.constant dense<0.000000e+00> : vector<8xf32>
      %15 = vector.multi_reduction <add>, %14, %cst_13 [0] : vector<128x8xf32> to vector<8xf32>
      %16 = vector.shape_cast %15 : vector<8xf32> to vector<1x8xf32>
      %17 = vector.shape_cast %16 : vector<1x8xf32> to vector<1x1x8xf32>
      %c0_14 = arith.constant 0 : index
      %c0_15 = arith.constant 0 : index
      %c0_16 = arith.constant 0 : index
      %18 = vector.load %arg5[%c0_14, %c0_15, %c0_16] : memref<1x1x8xf32, #tpu.memory_space<vmem>>, vector<1x1x8xf32>
      tpu.vector_store %arg5[%c0_14, %c0_15, %c0_16], %17 {strides = array<i32>} : memref<1x1x8xf32, #tpu.memory_space<vmem>>, vector<1x1x8xf32>,
      %19 = arith.mulf %14, %14 : vector<128x8xf32>
      %cst_17 = arith.constant dense<0.000000e+00> : vector<8xf32>
      %20 = vector.multi_reduction <add>, %19, %cst_17 [0] : vector<128x8xf32> to vector<8xf32>
      %21 = vector.shape_cast %20 : vector<8xf32> to vector<1x8xf32>
      %22 = vector.shape_cast %21 : vector<1x8xf32> to vector<1x1x8xf32>
      %c0_18 = arith.constant 0 : index
      %c0_19 = arith.constant 0 : index
      %c0_20 = arith.constant 0 : index
      %23 = vector.load %arg6[%c0_18, %c0_19, %c0_20] : memref<1x1x8xf32, #tpu.memory_space<vmem>>, vector<1x1x8xf32>
      tpu.vector_store %arg6[%c0_18, %c0_19, %c0_20], %22 {strides = array<i32>} : memref<1x1x8xf32, #tpu.memory_space<vmem>>, vector<1x1x8xf32>,
    } else {
    }
    return
  }
  func.func @transform_0(%arg0: i32, %arg1: i32) -> (i32, i32, i32) {
    %c0_i32 = arith.constant 0 : i32
    %c0_i32_0 = arith.constant 0 : i32
    return %arg1, %arg0, %c0_i32 : i32, i32, i32
  }
  func.func @transform_1(%arg0: i32, %arg1: i32) -> (i32, i32, i32) {
    %c0_i32 = arith.constant 0 : i32
    %c0_i32_0 = arith.constant 0 : i32
    %c0_i32_1 = arith.constant 0 : i32
    return %arg1, %c0_i32, %c0_i32_0 : i32, i32, i32
  }
  func.func @transform_2(%arg0: i32, %arg1: i32) -> (i32, i32) {
    %c0_i32 = arith.constant 0 : i32
    %c0_i32_0 = arith.constant 0 : i32
    return %arg0, %c0_i32 : i32, i32
  }
  func.func @transform_3(%arg0: i32, %arg1: i32) -> (i32, i32, i32) {
    %c0_i32 = arith.constant 0 : i32
    %c0_i32_0 = arith.constant 0 : i32
    %c0_i32_1 = arith.constant 0 : i32
    return %arg0, %c0_i32, %c0_i32_0 : i32, i32, i32
  }
  func.func @transform_4(%arg0: i32, %arg1: i32) -> (i32, i32, i32) {
    %c0_i32 = arith.constant 0 : i32
    %c0_i32_0 = arith.constant 0 : i32
    %c0_i32_1 = arith.constant 0 : i32
    return %arg0, %c0_i32, %c0_i32_0 : i32, i32, i32
  }
}

module attributes {stable_mosaic.version = 11 : i64} {
  func.func @_bn_relu_kernel(%arg0: i32, %arg1: memref<128x8xf32, #tpu.memory_space<vmem>>, %arg2: memref<1x8xf32, #tpu.memory_space<vmem>>, %arg3: memref<1x8xf32, #tpu.memory_space<vmem>>, %arg4: memref<128x8xf32, #tpu.memory_space<vmem>>) attributes {dimension_semantics = [#tpu.dimension_semantics<parallel>], iteration_bounds = array<i64: 1>, scalar_prefetch = 0 : i64, scratch_operands = 0 : i64, tpu.core_type = #tpu.core_type<tc>, window_params = [{transform_indices = @transform_0, window_bounds = array<i64: 128, 8>}, {pipeline_mode = #tpu.pipeline_mode<synchronous>, transform_indices = @transform_1, window_bounds = array<i64: 1, 8>}, {pipeline_mode = #tpu.pipeline_mode<synchronous>, transform_indices = @transform_2, window_bounds = array<i64: 1, 8>}, {transform_indices = @transform_3, window_bounds = array<i64: 128, 8>}]} {
    %c0 = arith.constant 0 : index
    %c0_0 = arith.constant 0 : index
    %0 = vector.load %arg1[%c0, %c0_0] : memref<128x8xf32, #tpu.memory_space<vmem>>, vector<128x8xf32>
    %c0_1 = arith.constant 0 : index
    %c0_2 = arith.constant 0 : index
    %1 = vector.load %arg2[%c0_1, %c0_2] : memref<1x8xf32, #tpu.memory_space<vmem>>, vector<1x8xf32>
    %2 = vector.broadcast %1 : vector<1x8xf32> to vector<128x8xf32>
    %3 = arith.mulf %0, %2 : vector<128x8xf32>
    %c0_3 = arith.constant 0 : index
    %c0_4 = arith.constant 0 : index
    %4 = vector.load %arg3[%c0_3, %c0_4] : memref<1x8xf32, #tpu.memory_space<vmem>>, vector<1x8xf32>
    %5 = vector.broadcast %4 : vector<1x8xf32> to vector<128x8xf32>
    %6 = arith.addf %3, %5 : vector<128x8xf32>
    %cst = arith.constant 0.000000e+00 : f32
    %7 = vector.broadcast %cst : f32 to vector<128x8xf32>
    %8 = arith.maximumf %6, %7 : vector<128x8xf32>
    %c0_5 = arith.constant 0 : index
    %c0_6 = arith.constant 0 : index
    %9 = vector.load %arg4[%c0_5, %c0_6] : memref<128x8xf32, #tpu.memory_space<vmem>>, vector<128x8xf32>
    tpu.vector_store %arg4[%c0_5, %c0_6], %8 {strides = array<i32>} : memref<128x8xf32, #tpu.memory_space<vmem>>, vector<128x8xf32>,
    return
  }
  func.func @transform_0(%arg0: i32) -> (i32, i32) {
    %c0_i32 = arith.constant 0 : i32
    %c0_i32_0 = arith.constant 0 : i32
    return %arg0, %c0_i32 : i32, i32
  }
  func.func @transform_1(%arg0: i32) -> (i32, i32) {
    %c0_i32 = arith.constant 0 : i32
    %c0_i32_0 = arith.constant 0 : i32
    %c0_i32_1 = arith.constant 0 : i32
    return %c0_i32, %c0_i32_0 : i32, i32
  }
  func.func @transform_2(%arg0: i32) -> (i32, i32) {
    %c0_i32 = arith.constant 0 : i32
    %c0_i32_0 = arith.constant 0 : i32
    %c0_i32_1 = arith.constant 0 : i32
    return %c0_i32, %c0_i32_0 : i32, i32
  }
  func.func @transform_3(%arg0: i32) -> (i32, i32) {
    %c0_i32 = arith.constant 0 : i32
    %c0_i32_0 = arith.constant 0 : i32
    return %arg0, %c0_i32 : i32, i32
  }
}

module attributes {stable_mosaic.version = 11 : i64} {
  func.func @_conv_stats_kernel(%arg0: i32, %arg1: i32, %arg2: memref<1x32x8xf32, #tpu.memory_space<vmem>>, %arg3: memref<1x8x16xf32, #tpu.memory_space<vmem>>, %arg4: memref<32x16xf32, #tpu.memory_space<vmem>>, %arg5: memref<1x1x16xf32, #tpu.memory_space<vmem>>, %arg6: memref<1x1x16xf32, #tpu.memory_space<vmem>>) attributes {dimension_semantics = [#tpu.dimension_semantics<parallel>, #tpu.dimension_semantics<arbitrary>], iteration_bounds = array<i64: 1, 9>, scalar_prefetch = 0 : i64, scratch_operands = 0 : i64, tpu.core_type = #tpu.core_type<tc>, window_params = [{transform_indices = @transform_0, window_bounds = array<i64: 1, 32, 8>}, {transform_indices = @transform_1, window_bounds = array<i64: 1, 8, 16>}, {transform_indices = @transform_2, window_bounds = array<i64: 32, 16>}, {transform_indices = @transform_3, window_bounds = array<i64: 1, 1, 16>}, {transform_indices = @transform_4, window_bounds = array<i64: 1, 1, 16>}]} {
    %c0_i32 = arith.constant 0 : i32
    %0 = arith.cmpi eq, %arg1, %c0_i32 : i32
    %1 = arith.extui %0 : i1 to i32
    %c0_i32_0 = arith.constant 0 : i32
    %2 = arith.cmpi ne, %1, %c0_i32_0 : i32
    scf.if %2 {
      %cst_11 = arith.constant 0.000000e+00 : f32
      %14 = vector.broadcast %cst_11 : f32 to vector<32x16xf32>
      %c0_12 = arith.constant 0 : index
      %c0_13 = arith.constant 0 : index
      %15 = vector.load %arg4[%c0_12, %c0_13] : memref<32x16xf32, #tpu.memory_space<vmem>>, vector<32x16xf32>
      tpu.vector_store %arg4[%c0_12, %c0_13], %14 {strides = array<i32>} : memref<32x16xf32, #tpu.memory_space<vmem>>, vector<32x16xf32>,
    } else {
    }
    %c0 = arith.constant 0 : index
    %c0_1 = arith.constant 0 : index
    %3 = vector.load %arg4[%c0, %c0_1] : memref<32x16xf32, #tpu.memory_space<vmem>>, vector<32x16xf32>
    %c0_2 = arith.constant 0 : index
    %c0_3 = arith.constant 0 : index
    %c0_4 = arith.constant 0 : index
    %4 = vector.load %arg2[%c0_2, %c0_3, %c0_4] : memref<1x32x8xf32, #tpu.memory_space<vmem>>, vector<1x32x8xf32>
    %5 = vector.shape_cast %4 : vector<1x32x8xf32> to vector<32x8xf32>
    %c0_5 = arith.constant 0 : index
    %c0_6 = arith.constant 0 : index
    %c0_7 = arith.constant 0 : index
    %6 = vector.load %arg3[%c0_5, %c0_6, %c0_7] : memref<1x8x16xf32, #tpu.memory_space<vmem>>, vector<1x8x16xf32>
    %7 = vector.shape_cast %6 : vector<1x8x16xf32> to vector<8x16xf32>
    %cst = arith.constant dense<0.000000e+00> : vector<32x16xf32>
    %8 = tpu.matmul %5, %7, %cst {dimension_numbers = #tpu.dot_dimension_numbers<[1], [0], [0], [1], [0, 0, 1, 1], [], []>} : vector<32x8xf32>, vector<8x16xf32>, vector<32x16xf32> -> vector<32x16xf32>
    %9 = arith.addf %3, %8 : vector<32x16xf32>
    %c0_8 = arith.constant 0 : index
    %c0_9 = arith.constant 0 : index
    %10 = vector.load %arg4[%c0_8, %c0_9] : memref<32x16xf32, #tpu.memory_space<vmem>>, vector<32x16xf32>
    tpu.vector_store %arg4[%c0_8, %c0_9], %9 {strides = array<i32>} : memref<32x16xf32, #tpu.memory_space<vmem>>, vector<32x16xf32>,
    %c8_i32 = arith.constant 8 : i32
    %11 = arith.cmpi eq, %arg1, %c8_i32 : i32
    %12 = arith.extui %11 : i1 to i32
    %c0_i32_10 = arith.constant 0 : i32
    %13 = arith.cmpi ne, %12, %c0_i32_10 : i32
    scf.if %13 {
      %c0_11 = arith.constant 0 : index
      %c0_12 = arith.constant 0 : index
      %14 = vector.load %arg4[%c0_11, %c0_12] : memref<32x16xf32, #tpu.memory_space<vmem>>, vector<32x16xf32>
      %cst_13 = arith.constant dense<0.000000e+00> : vector<16xf32>
      %15 = vector.multi_reduction <add>, %14, %cst_13 [0] : vector<32x16xf32> to vector<16xf32>
      %16 = vector.shape_cast %15 : vector<16xf32> to vector<1x16xf32>
      %17 = vector.shape_cast %16 : vector<1x16xf32> to vector<1x1x16xf32>
      %c0_14 = arith.constant 0 : index
      %c0_15 = arith.constant 0 : index
      %c0_16 = arith.constant 0 : index
      %18 = vector.load %arg5[%c0_14, %c0_15, %c0_16] : memref<1x1x16xf32, #tpu.memory_space<vmem>>, vector<1x1x16xf32>
      tpu.vector_store %arg5[%c0_14, %c0_15, %c0_16], %17 {strides = array<i32>} : memref<1x1x16xf32, #tpu.memory_space<vmem>>, vector<1x1x16xf32>,
      %19 = arith.mulf %14, %14 : vector<32x16xf32>
      %cst_17 = arith.constant dense<0.000000e+00> : vector<16xf32>
      %20 = vector.multi_reduction <add>, %19, %cst_17 [0] : vector<32x16xf32> to vector<16xf32>
      %21 = vector.shape_cast %20 : vector<16xf32> to vector<1x16xf32>
      %22 = vector.shape_cast %21 : vector<1x16xf32> to vector<1x1x16xf32>
      %c0_18 = arith.constant 0 : index
      %c0_19 = arith.constant 0 : index
      %c0_20 = arith.constant 0 : index
      %23 = vector.load %arg6[%c0_18, %c0_19, %c0_20] : memref<1x1x16xf32, #tpu.memory_space<vmem>>, vector<1x1x16xf32>
      tpu.vector_store %arg6[%c0_18, %c0_19, %c0_20], %22 {strides = array<i32>} : memref<1x1x16xf32, #tpu.memory_space<vmem>>, vector<1x1x16xf32>,
    } else {
    }
    return
  }
  func.func @transform_0(%arg0: i32, %arg1: i32) -> (i32, i32, i32) {
    %c0_i32 = arith.constant 0 : i32
    %c0_i32_0 = arith.constant 0 : i32
    return %arg1, %arg0, %c0_i32 : i32, i32, i32
  }
  func.func @transform_1(%arg0: i32, %arg1: i32) -> (i32, i32, i32) {
    %c0_i32 = arith.constant 0 : i32
    %c0_i32_0 = arith.constant 0 : i32
    %c0_i32_1 = arith.constant 0 : i32
    return %arg1, %c0_i32, %c0_i32_0 : i32, i32, i32
  }
  func.func @transform_2(%arg0: i32, %arg1: i32) -> (i32, i32) {
    %c0_i32 = arith.constant 0 : i32
    %c0_i32_0 = arith.constant 0 : i32
    return %arg0, %c0_i32 : i32, i32
  }
  func.func @transform_3(%arg0: i32, %arg1: i32) -> (i32, i32, i32) {
    %c0_i32 = arith.constant 0 : i32
    %c0_i32_0 = arith.constant 0 : i32
    %c0_i32_1 = arith.constant 0 : i32
    return %arg0, %c0_i32, %c0_i32_0 : i32, i32, i32
  }
  func.func @transform_4(%arg0: i32, %arg1: i32) -> (i32, i32, i32) {
    %c0_i32 = arith.constant 0 : i32
    %c0_i32_0 = arith.constant 0 : i32
    %c0_i32_1 = arith.constant 0 : i32
    return %arg0, %c0_i32, %c0_i32_0 : i32, i32, i32
  }
}

module attributes {stable_mosaic.version = 11 : i64} {
  func.func @_bn_relu_kernel(%arg0: i32, %arg1: memref<32x16xf32, #tpu.memory_space<vmem>>, %arg2: memref<1x16xf32, #tpu.memory_space<vmem>>, %arg3: memref<1x16xf32, #tpu.memory_space<vmem>>, %arg4: memref<32x16xf32, #tpu.memory_space<vmem>>) attributes {dimension_semantics = [#tpu.dimension_semantics<parallel>], iteration_bounds = array<i64: 1>, scalar_prefetch = 0 : i64, scratch_operands = 0 : i64, tpu.core_type = #tpu.core_type<tc>, window_params = [{transform_indices = @transform_0, window_bounds = array<i64: 32, 16>}, {pipeline_mode = #tpu.pipeline_mode<synchronous>, transform_indices = @transform_1, window_bounds = array<i64: 1, 16>}, {pipeline_mode = #tpu.pipeline_mode<synchronous>, transform_indices = @transform_2, window_bounds = array<i64: 1, 16>}, {transform_indices = @transform_3, window_bounds = array<i64: 32, 16>}]} {
    %c0 = arith.constant 0 : index
    %c0_0 = arith.constant 0 : index
    %0 = vector.load %arg1[%c0, %c0_0] : memref<32x16xf32, #tpu.memory_space<vmem>>, vector<32x16xf32>
    %c0_1 = arith.constant 0 : index
    %c0_2 = arith.constant 0 : index
    %1 = vector.load %arg2[%c0_1, %c0_2] : memref<1x16xf32, #tpu.memory_space<vmem>>, vector<1x16xf32>
    %2 = vector.broadcast %1 : vector<1x16xf32> to vector<32x16xf32>
    %3 = arith.mulf %0, %2 : vector<32x16xf32>
    %c0_3 = arith.constant 0 : index
    %c0_4 = arith.constant 0 : index
    %4 = vector.load %arg3[%c0_3, %c0_4] : memref<1x16xf32, #tpu.memory_space<vmem>>, vector<1x16xf32>
    %5 = vector.broadcast %4 : vector<1x16xf32> to vector<32x16xf32>
    %6 = arith.addf %3, %5 : vector<32x16xf32>
    %cst = arith.constant 0.000000e+00 : f32
    %7 = vector.broadcast %cst : f32 to vector<32x16xf32>
    %8 = arith.maximumf %6, %7 : vector<32x16xf32>
    %c0_5 = arith.constant 0 : index
    %c0_6 = arith.constant 0 : index
    %9 = vector.load %arg4[%c0_5, %c0_6] : memref<32x16xf32, #tpu.memory_space<vmem>>, vector<32x16xf32>
    tpu.vector_store %arg4[%c0_5, %c0_6], %8 {strides = array<i32>} : memref<32x16xf32, #tpu.memory_space<vmem>>, vector<32x16xf32>,
    return
  }
  func.func @transform_0(%arg0: i32) -> (i32, i32) {
    %c0_i32 = arith.constant 0 : i32
    %c0_i32_0 = arith.constant 0 : i32
    return %arg0, %c0_i32 : i32, i32
  }
  func.func @transform_1(%arg0: i32) -> (i32, i32) {
    %c0_i32 = arith.constant 0 : i32
    %c0_i32_0 = arith.constant 0 : i32
    %c0_i32_1 = arith.constant 0 : i32
    return %c0_i32, %c0_i32_0 : i32, i32
  }
  func.func @transform_2(%arg0: i32) -> (i32, i32) {
    %c0_i32 = arith.constant 0 : i32
    %c0_i32_0 = arith.constant 0 : i32
    %c0_i32_1 = arith.constant 0 : i32
    return %c0_i32, %c0_i32_0 : i32, i32
  }
  func.func @transform_3(%arg0: i32) -> (i32, i32) {
    %c0_i32 = arith.constant 0 : i32
    %c0_i32_0 = arith.constant 0 : i32
    return %arg0, %c0_i32 : i32, i32
  }
}

</mosaic_0001>

<bundles_post_ra>
// kernel: _lambda_.5
= control target key start
LH: loop header
LB: loop body
LE: loop exit
PB: predicated region body
PF: predicated region fallthrough
CT: control target
= control target key end

     0   :  { %vm86_vm0 = vcmask 64512   ;;  %s265_s0 = inlined_call_operand.vmem [shape: f32[128,8], index: 0, kind: input, shape index: {}]   ;;  %s266_s1 = inlined_call_operand.vmem [shape: f32[1,8], index: 1, kind: input, shape index: {}]   ;;  %s267_s2 = inlined_call_operand.vmem [shape: f32[1,8], index: 2, kind: input, shape index: {}]   ;;  %s268_s3 = inlined_call_operand.vmem [shape: f32[128,8], index: 3, kind: output, shape index: {}]  }
   0x1   :  { %v14_v0 = vld [vmem:[%s265_s0] sm:$0xff]  ;;  %v15_v3 = vld [vmem:[%s265_s0 + $0x8] sm:$0xff]  ;;  %v16_v6 = vld [vmem:[%s265_s0 + $0x10] sm:$0xff] }
   0x2   :  { %v107_v1 = vld [vmem:[%s266_s1] ss:$0 sm:$0xff]  ;;  %v17_v7 = vld [vmem:[%s265_s0 + $0x18] sm:$0xff]  ;;  %v19_v12 = vld [vmem:[%s265_s0 + $0x28] sm:$0xff] }
   0x3   :  { %v138_v2 = vld [vmem:[%s267_s2] ss:$0 sm:$0xff]  ;;  %v34_v4 = vmul.f32 %v107_v1, %v14_v0  ;;  %v35_v5 = vmul.f32 %v107_v1, %v15_v3  ;;  %v36_v9 = vmul.f32 %v107_v1, %v16_v6  ;;  %v37_v10 = vmul.f32 %v107_v1, %v17_v7  ;;  %v20_v13 = vld [vmem:[%s265_s0 + $0x30] sm:$0xff]  ;;  %v21_v14 = vld [vmem:[%s265_s0 + $0x38] sm:$0xff] }
   0x4   :  { %v18_v8 = vld [vmem:[%s265_s0 + $0x20] sm:$0xff]  ;;  %v39_v17 = vmul.f32 %v107_v1, %v19_v12  ;;  %v40_v18 = vmul.f32 %v107_v1, %v20_v13  ;;  %v41_v22 = vmul.f32 %v107_v1, %v21_v14  ;;  %v23_v24 = vld [vmem:[%s265_s0 + $0x48] sm:$0xff]  ;;  %v24_v29 = vld [vmem:[%s265_s0 + $0x50] sm:$0xff] }
   0x5   :  { %v38_v11 = vmul.f32 %v107_v1, %v18_v8  ;;  %v54_v15 = vadd.f32 %v138_v2, %v34_v4  ;;  %v55_v16 = vadd.f32 %v138_v2, %v35_v5  ;;  %v56_v19 = vadd.f32 %v138_v2, %v36_v9  ;;  %v22_v23 = vld [vmem:[%s265_s0 + $0x40] sm:$0xff]  ;;  %v25_v30 = vld [vmem:[%s265_s0 + $0x58] sm:$0xff]  ;;  %v27_v35 = vld [vmem:[%s265_s0 + $0x68] sm:$0xff] }
   0x6   :  { %v57_v20 = vadd.f32 %v138_v2, %v37_v10  ;;  %v59_v27 = vadd.f32 %v138_v2, %v39_v17  ;;  %v60_v28 = vadd.f32 %v138_v2, %v40_v18  ;;  %v26_v31 = vld [vmem:[%s265_s0 + $0x60] sm:$0xff]  ;;  %v61_v34 = vadd.f32 %v138_v2, %v41_v22  ;;  %v28_v36 = vld [vmem:[%s265_s0 + $0x70] sm:$0xff]  ;;  %v29_v41 = vld [vmem:[%s265_s0 + $0x78] sm:$0xff] }
   0x7   :  { %v58_v21 = vadd.f32 %v138_v2, %v38_v11  ;;  %v70_v25 = vmax.f32 %v54_v15, 0.0  ;;  %v71_v26 = vmax.f32 %v55_v16, 0.0  ;;  %v72_v32 = vmax.f32 %v56_v19, 0.0 }
   0x8   :  { %v73_v33 = vmax.f32 %v57_v20, 0.0  ;;  %v75_v38 = vmax.f32 %v59_v27, 0.0  ;;  %v42_v39 = vmul.f32 %v107_v1, %v22_v23  ;;  %v43_v40 = vmul.f32 %v107_v1, %v23_v24 }
   0x9   :  { %87 = vst.msk [vmem:[%s268_s3] sm:$0xff] %vm86_vm0, %v70_v25  ;;  %v74_v37 = vmax.f32 %v58_v21, 0.0  ;;  %v76_v42 = vmax.f32 %v60_v28, 0.0  ;;  %v44_v43 = vmul.f32 %v107_v1, %v24_v29  ;;  %v45_v44 = vmul.f32 %v107_v1, %v25_v30 }
   0xa   :  { %88 = vst.msk [vmem:[%s268_s3 + $0x8] sm:$0xff] %vm86_vm0, %v71_v26  ;;  %v46_v45 = vmul.f32 %v107_v1, %v26_v31  ;;  %v62_v46 = vadd.f32 %v138_v2, %v42_v39  ;;  %v63_v47 = vadd.f32 %v138_v2, %v43_v40  ;;  %v47_v48 = vmul.f32 %v107_v1, %v27_v35 }
   0xb   :  { %89 = vst.msk [vmem:[%s268_s3 + $0x10] sm:$0xff] %vm86_vm0, %v72_v32  ;;  %v48_v49 = vmul.f32 %v107_v1, %v28_v36  ;;  %v77_v50 = vmax.f32 %v61_v34, 0.0  ;;  %v64_v51 = vadd.f32 %v138_v2, %v44_v43  ;;  %v65_v52 = vadd.f32 %v138_v2, %v45_v44 }
   0xc   :  { %90 = vst.msk [vmem:[%s268_s3 + $0x18] sm:$0xff] %vm86_vm0, %v73_v33  ;;  %v49_v53 = vmul.f32 %v107_v1, %v29_v41  ;;  %v78_v54 = vmax.f32 %v62_v46, 0.0  ;;  %v66_v55 = vadd.f32 %v138_v2, %v46_v45  ;;  %v79_v56 = vmax.f32 %v63_v47, 0.0 }
   0xd   :  { %91 = vst.msk [vmem:[%s268_s3 + $0x20] sm:$0xff] %vm86_vm0, %v74_v37  ;;  %v67_v57 = vadd.f32 %v138_v2, %v47_v48  ;;  %v80_v58 = vmax.f32 %v64_v51, 0.0  ;;  %v68_v59 = vadd.f32 %v138_v2, %v48_v49  ;;  %v81_v60 = vmax.f32 %v65_v52, 0.0 }
   0xe   :  { %92 = vst.msk [vmem:[%s268_s3 + $0x28] sm:$0xff] %vm86_vm0, %v75_v38  ;;  %v69_v61 = vadd.f32 %v138_v2, %v49_v53  ;;  %v82_v62 = vmax.f32 %v66_v55, 0.0 }
   0xf   :  { %93 = vst.msk [vmem:[%s268_s3 + $0x30] sm:$0xff] %vm86_vm0, %v76_v42  ;;  %v83_v63 = vmax.f32 %v67_v57, 0.0  ;;  %v84_v0 = vmax.f32 %v68_v59, 0.0 }
  0x10   :  { %94 = vst.msk [vmem:[%s268_s3 + $0x38] sm:$0xff] %vm86_vm0, %v77_v50  ;;  %v85_v1 = vmax.f32 %v69_v61, 0.0 }
  0x11   :  { %95 = vst.msk [vmem:[%s268_s3 + $0x40] sm:$0xff] %vm86_vm0, %v78_v54 }
  0x12   :  { %96 = vst.msk [vmem:[%s268_s3 + $0x48] sm:$0xff] %vm86_vm0, %v79_v56 }
  0x13   :  { %97 = vst.msk [vmem:[%s268_s3 + $0x50] sm:$0xff] %vm86_vm0, %v80_v58 }
  0x14   :  { %98 = vst.msk [vmem:[%s268_s3 + $0x58] sm:$0xff] %vm86_vm0, %v81_v60 }
  0x15   :  { %99 = vst.msk [vmem:[%s268_s3 + $0x60] sm:$0xff] %vm86_vm0, %v82_v62 }
  0x16   :  { %100 = vst.msk [vmem:[%s268_s3 + $0x68] sm:$0xff] %vm86_vm0, %v83_v63 }
  0x17   :  { %101 = vst.msk [vmem:[%s268_s3 + $0x70] sm:$0xff] %vm86_vm0, %v84_v0 }
  0x18   :  { %102 = vst.msk [vmem:[%s268_s3 + $0x78] sm:$0xff] %vm86_vm0, %v85_v1 }

// kernel: _lambda_.4
= control target key start
LH: loop header
LB: loop body
LE: loop exit
PB: predicated region body
PF: predicated region fallthrough
CT: control target
= control target key end

     0   :  { %s814_s15 = smov 0   ;;  %s816_s16 = smov 0   ;;  %s1149_s0 = inlined_call_operand.vmem [shape: f32[9,128,4], index: 0, kind: input, shape index: {}]   ;;  %s1150_s1 = inlined_call_operand.vmem [shape: f32[9,4,8], index: 1, kind: input, shape index: {}]   ;;  %s1151_s2 = inlined_call_operand.vmem [shape: f32[128,8], index: 2, kind: output, shape index: {0}]   ;;  %s1152_s3 = inlined_call_operand.vmem [shape: f32[1,1,8], index: 3, kind: output, shape index: {1}]   ;;  %s1153_s4 = inlined_call_operand.vmem [shape: f32[1,1,8], index: 4, kind: output, shape index: {2}]  }
   0x1   :  { %s818_s17 = smov 0  }
   0x2 LB: > { %s24_s18 = sadd.s32 1, %s782_s16  ;;  %p706_p0 = scmp.ge.s32.totalorder %s786_s17, 1  ;;  %s786_s17 = sphi %s818_s17, %s15_s17   ;;  %s782_s16 = sphi %s816_s16, %s1155_s16   ;;  %s778_s15 = sphi %s814_s15, %s1154_s15  }
   0x3   : > { %p25_p1 = scmp.ge.s32.totalorder %s24_s18, 9  ;;  %p195_p2 = scmp.lt.s32.totalorder %s786_s17, 10 }
   0x5   : > { %s1157_s18 = smov (%p25_p1, %s24_s18), 0  ;;  %p196_p3 = pnand %p706_p0, %p195_p2 }
   0x6   : > { %p236_p4 = scmp.lt.s32.totalorder (!%p196_p3), %s778_s15, 8  ;;  %p710_p5 = scmp.ne.s32.totalorder (!%p196_p3), %s778_s15, 0 }
   0x7   : > { %199 = sbr.rel (%p196_p3) target bundleno = 245 (0xf5), region = 28 }
   0xc   : > { %s237_s19 = scalar_select %p236_p4, %s778_s15, 8 }
   0xd   : > { %264 = sbr.rel (%p710_p5) target bundleno = 35 (0x23), region = 32 }
   0xe   : > { %s735_s20 = sshll.u32 %s237_s19, 7  ;;  %s709_s21 = sshll.u32 %s237_s19, 2 }
   0xf   : > { %s839_s24 = scalar_lea.vmem %s1149_s0, %s735_s20  ;;  %s248_s27 = scalar_lea.vmem %s1150_s1, %s709_s21 }
  0x12   : > { %vm265_vm0 = vcmask 64512   ;;  %v788_v0 = vmov 0.0  }
  0x13   : > { %266 = vst.msk [vmem:[%s1151_s2] sm:$0xff] %vm265_vm0, %v788_v0 }
  0x14   : > { %267 = vst.msk [vmem:[%s1151_s2 + $0x8] sm:$0xff] %vm265_vm0, %v788_v0 }
  0x15   : > { %268 = vst.msk [vmem:[%s1151_s2 + $0x10] sm:$0xff] %vm265_vm0, %v788_v0 }
  0x16   : > { %269 = vst.msk [vmem:[%s1151_s2 + $0x18] sm:$0xff] %vm265_vm0, %v788_v0 }
  0x17   : > { %270 = vst.msk [vmem:[%s1151_s2 + $0x20] sm:$0xff] %vm265_vm0, %v788_v0 }
  0x18   : > { %271 = vst.msk [vmem:[%s1151_s2 + $0x28] sm:$0xff] %vm265_vm0, %v788_v0 }
  0x19   : > { %272 = vst.msk [vmem:[%s1151_s2 + $0x30] sm:$0xff] %vm265_vm0, %v788_v0 }
  0x1a   : > { %273 = vst.msk [vmem:[%s1151_s2 + $0x38] sm:$0xff] %vm265_vm0, %v788_v0 }
  0x1b   : > { %274 = vst.msk [vmem:[%s1151_s2 + $0x40] sm:$0xff] %vm265_vm0, %v788_v0 }
  0x1c   : > { %275 = vst.msk [vmem:[%s1151_s2 + $0x48] sm:$0xff] %vm265_vm0, %v788_v0 }
  0x1d   : > { %276 = vst.msk [vmem:[%s1151_s2 + $0x50] sm:$0xff] %vm265_vm0, %v788_v0 }
  0x1e   : > { %277 = vst.msk [vmem:[%s1151_s2 + $0x58] sm:$0xff] %vm265_vm0, %v788_v0 }
  0x1f   : > { %278 = vst.msk [vmem:[%s1151_s2 + $0x60] sm:$0xff] %vm265_vm0, %v788_v0 }
  0x20   : > { %279 = vst.msk [vmem:[%s1151_s2 + $0x68] sm:$0xff] %vm265_vm0, %v788_v0 }
  0x21   : > { %280 = vst.msk [vmem:[%s1151_s2 + $0x70] sm:$0xff] %vm265_vm0, %v788_v0 }
  0x22   : > { %281 = vst.msk [vmem:[%s1151_s2 + $0x78] sm:$0xff] %vm265_vm0, %v788_v0 }
  0x23 PF: > { %v314_v1 = vld [vmem:[%s248_s27] sm:$0xf]  ;;  %vm364_vm1 = vcmask 1043456   ;;  %vm315_vm2 = vcmask 31744   ;;  %v307_v6 = vld [vmem:[%s839_s24 + $0x48] sm:$0xff]  ;;  %v308_v10 = vld [vmem:[%s839_s24 + $0x50] sm:$0xff] }
  0x24   : > { %v306_v2 = vld [vmem:[%s839_s24 + $0x40] sm:$0xff]  ;;  %737 = vmatpush.msk.msra.mxu2 %vm364_vm1, %v314_v1  ;;  %738 = vmatpush.msk.msra.mxu3 %vm364_vm1, %v314_v1  ;;  %v311_v7 = vld [vmem:[%s839_s24 + $0x68] sm:$0xff]  ;;  %v312_v11 = vld [vmem:[%s839_s24 + $0x70] sm:$0xff]  ;;  %vm449_vm3 = vcmask 64512   ;;  %p728_p6 = scmp.ne.s32.totalorder %s778_s15, 8 }
  0x25   : > { %v310_v3 = vld [vmem:[%s839_s24 + $0x60] sm:$0xff]  ;;  %720 = vmatmul.msk.f32.vlgmr.msra.gmra.mxu2 %vm315_vm2, %v306_v2  ;;  %711 = vmatpush.msk.msra.mxu0 %vm364_vm1, %v314_v1  ;;  %v299_v8 = vld [vmem:[%s839_s24 + $0x8] sm:$0xff]  ;;  %v300_v12 = vld [vmem:[%s839_s24 + $0x10] sm:$0xff] }
  0x26   : > { %v298_v4 = vld [vmem:[%s839_s24] sm:$0xff]  ;;  %724 = vmatmul.msk.f32.vlgmr.msra.gmra.mxu3 %vm315_vm2, %v310_v3  ;;  %736 = vmatpush.msk.msra.mxu1 %vm364_vm1, %v314_v1  ;;  %v303_v9 = vld [vmem:[%s839_s24 + $0x28] sm:$0xff]  ;;  %v304_v13 = vld [vmem:[%s839_s24 + $0x30] sm:$0xff] }
  0x27   : > { %v302_v5 = vld [vmem:[%s839_s24 + $0x20] sm:$0xff]  ;;  %712 = vmatmul.msk.f32.vlgmr.msra.gmra.mxu0 %vm315_vm2, %v298_v4  ;;  %v309_v14 = vld [vmem:[%s839_s24 + $0x58] sm:$0xff]  ;;  %v283_v30 = vld [vmem:[%s1151_s2 + $0x8] sm:$0xff] }
  0x28   : > { %716 = vmatmul.msk.f32.vlgmr.msra.gmra.mxu1 %vm315_vm2, %v302_v5  ;;  %v313_v15 = vld [vmem:[%s839_s24 + $0x78] sm:$0xff]  ;;  %v282_v18 = vld [vmem:[%s1151_s2] sm:$0xff]  ;;  %v287_v31 = vld [vmem:[%s1151_s2 + $0x28] sm:$0xff] }
  0x29   : > { %v301_v16 = vld [vmem:[%s839_s24 + $0x18] sm:$0xff]  ;;  %v286_v19 = vld [vmem:[%s1151_s2 + $0x20] sm:$0xff]  ;;  %v291_v36 = vld [vmem:[%s1151_s2 + $0x48] sm:$0xff] }
  0x2a   : > { %v305_v17 = vld [vmem:[%s839_s24 + $0x38] sm:$0xff]  ;;  %v290_v24 = vld [vmem:[%s1151_s2 + $0x40] sm:$0xff]  ;;  %v295_v37 = vld [vmem:[%s1151_s2 + $0x68] sm:$0xff] }
  0x2b   : > { %v294_v25 = vld [vmem:[%s1151_s2 + $0x60] sm:$0xff]  ;;  %v284_v42 = vld [vmem:[%s1151_s2 + $0x10] sm:$0xff]  ;;  %v285_v54 = vld [vmem:[%s1151_s2 + $0x18] sm:$0xff] }
  0x2c   : > { %v288_v43 = vld [vmem:[%s1151_s2 + $0x30] sm:$0xff]  ;;  %v289_v55 = vld [vmem:[%s1151_s2 + $0x38] sm:$0xff] }
  0x2d   : > { %721 = vmatmul.msk.f32.gmra.mxu2 %vm315_vm2, %v307_v6  ;;  %v292_v48 = vld [vmem:[%s1151_s2 + $0x50] sm:$0xff]  ;;  %v293_v60 = vld [vmem:[%s1151_s2 + $0x58] sm:$0xff] }
  0x2e   : > { %725 = vmatmul.msk.f32.gmra.mxu3 %vm315_vm2, %v311_v7  ;;  %v296_v49 = vld [vmem:[%s1151_s2 + $0x70] sm:$0xff]  ;;  %v297_v61 = vld [vmem:[%s1151_s2 + $0x78] sm:$0xff] }
  0x2f   : > { %713 = vmatmul.msk.f32.gmra.mxu0 %vm315_vm2, %v299_v8 }
  0x30   : > { %717 = vmatmul.msk.f32.gmra.mxu1 %vm315_vm2, %v303_v9 }
  0x35   : > { %722 = vmatmul.msk.f32.gmra.mxu2 %vm315_vm2, %v308_v10 }
  0x36   : > { %726 = vmatmul.msk.f32.gmra.mxu3 %vm315_vm2, %v312_v11 }
  0x37   : > { %714 = vmatmul.msk.f32.gmra.mxu0 %vm315_vm2, %v300_v12 }
  0x38   : > { %718 = vmatmul.msk.f32.gmra.mxu1 %vm315_vm2, %v304_v13 }
  0x3d   : > { %723 = vmatmul.msk.f32.gmra.mxu2 %vm315_vm2, %v309_v14 }
  0x3e   : > { %727 = vmatmul.msk.f32.gmra.mxu3 %vm315_vm2, %v313_v15 }
  0x3f   : > { %715 = vmatmul.msk.f32.gmra.mxu0 %vm315_vm2, %v301_v16 }
  0x40   : > { %719 = vmatmul.msk.f32.gmra.mxu1 %vm315_vm2, %v305_v17 }
  0xa4   : > { %v385_v20 = vpop.f32.mrf.mxu0 }
  0xa5   : > { %v397_v21 = vpop.f32.mrf.mxu1  ;;  %v433_v22 = vadd.f32 %v385_v20, %v282_v18 }
  0xa6   : > { %v437_v23 = vadd.f32 %v397_v21, %v286_v19 }
  0xa7   : > { %450 = vst.msk [vmem:[%s1151_s2] sm:$0xff] %vm449_vm3, %v433_v22 }
  0xa8   : > { %454 = vst.msk [vmem:[%s1151_s2 + $0x20] sm:$0xff] %vm449_vm3, %v437_v23  ;;  %v409_v26 = vpop.f32.mrf.mxu2 }
  0xa9   : > { %v421_v27 = vpop.f32.mrf.mxu3  ;;  %v441_v28 = vadd.f32 %v409_v26, %v290_v24 }
  0xaa   : > { %v445_v29 = vadd.f32 %v421_v27, %v294_v25 }
  0xab   : > { %458 = vst.msk [vmem:[%s1151_s2 + $0x40] sm:$0xff] %vm449_vm3, %v441_v28 }
  0xac   : > { %462 = vst.msk [vmem:[%s1151_s2 + $0x60] sm:$0xff] %vm449_vm3, %v445_v29  ;;  %v388_v32 = vpop.f32.mrf.mxu0 }
  0xad   : > { %v400_v33 = vpop.f32.mrf.mxu1  ;;  %v434_v34 = vadd.f32 %v388_v32, %v283_v30 }
  0xae   : > { %v438_v35 = vadd.f32 %v400_v33, %v287_v31 }
  0xaf   : > { %451 = vst.msk [vmem:[%s1151_s2 + $0x8] sm:$0xff] %vm449_vm3, %v434_v34 }
  0xb0   : > { %455 = vst.msk [vmem:[%s1151_s2 + $0x28] sm:$0xff] %vm449_vm3, %v438_v35  ;;  %v412_v38 = vpop.f32.mrf.mxu2 }
  0xb1   : > { %v424_v39 = vpop.f32.mrf.mxu3  ;;  %v442_v40 = vadd.f32 %v412_v38, %v291_v36 }
  0xb2   : > { %v446_v41 = vadd.f32 %v424_v39, %v295_v37 }
  0xb3   : > { %459 = vst.msk [vmem:[%s1151_s2 + $0x48] sm:$0xff] %vm449_vm3, %v442_v40 }
  0xb4   : > { %463 = vst.msk [vmem:[%s1151_s2 + $0x68] sm:$0xff] %vm449_vm3, %v446_v41  ;;  %v391_v44 = vpop.f32.mrf.mxu0 }
  0xb5   : > { %v403_v45 = vpop.f32.mrf.mxu1  ;;  %v435_v46 = vadd.f32 %v391_v44, %v284_v42 }
  0xb6   : > { %v439_v47 = vadd.f32 %v403_v45, %v288_v43 }
  0xb7   : > { %452 = vst.msk [vmem:[%s1151_s2 + $0x10] sm:$0xff] %vm449_vm3, %v435_v46 }
  0xb8   : > { %456 = vst.msk [vmem:[%s1151_s2 + $0x30] sm:$0xff] %vm449_vm3, %v439_v47  ;;  %v415_v50 = vpop.f32.mrf.mxu2 }
  0xb9   : > { %v427_v51 = vpop.f32.mrf.mxu3  ;;  %v443_v52 = vadd.f32 %v415_v50, %v292_v48 }
  0xba   : > { %v447_v53 = vadd.f32 %v427_v51, %v296_v49 }
  0xbb   : > { %460 = vst.msk [vmem:[%s1151_s2 + $0x50] sm:$0xff] %vm449_vm3, %v443_v52 }
  0xbc   : > { %464 = vst.msk [vmem:[%s1151_s2 + $0x70] sm:$0xff] %vm449_vm3, %v447_v53  ;;  %v394_v56 = vpop.f32.mrf.mxu0 }
  0xbd   : > { %v406_v57 = vpop.f32.mrf.mxu1  ;;  %v436_v58 = vadd.f32 %v394_v56, %v285_v54 }
  0xbe   : > { %v440_v59 = vadd.f32 %v406_v57, %v289_v55 }
  0xbf   : > { %453 = vst.msk [vmem:[%s1151_s2 + $0x18] sm:$0xff] %vm449_vm3, %v436_v58 }
  0xc0   : > { %457 = vst.msk [vmem:[%s1151_s2 + $0x38] sm:$0xff] %vm449_vm3, %v440_v59  ;;  %v418_v62 = vpop.f32.mrf.mxu2  ;;  %469 = sbr.rel (%p728_p6) target bundleno = 245 (0xf5), region = 36 }
  0xc1   : > { %v430_v63 = vpop.f32.mrf.mxu3  ;;  %v444_v0 = vadd.f32 %v418_v62, %v293_v60 }
  0xc2   : > { %v448_v1 = vadd.f32 %v430_v63, %v297_v61 }
  0xc3   : > { %461 = vst.msk [vmem:[%s1151_s2 + $0x58] sm:$0xff] %vm449_vm3, %v444_v0 }
  0xc4   : > { %465 = vst.msk [vmem:[%s1151_s2 + $0x78] sm:$0xff] %vm449_vm3, %v448_v1 }
  0xc5   : > { %v470_v2 = vld [vmem:[%s1151_s2] sm:$0xff]  ;;  %v471_v3 = vld [vmem:[%s1151_s2 + $0x8] sm:$0xff]  ;;  %v472_v4 = vld [vmem:[%s1151_s2 + $0x10] sm:$0xff]  ;;  %vm523_vm4 = vcmask 57344  }
  0xc6   : > { %v486_v5 = vsel %vm449_vm3, %v470_v2, 0.0  ;;  %v487_v6 = vsel %vm449_vm3, %v471_v3, 0.0  ;;  %v489_v7 = vsel %vm449_vm3, %v472_v4, 0.0  ;;  %v473_v8 = vld [vmem:[%s1151_s2 + $0x18] sm:$0xff]  ;;  %v474_v11 = vld [vmem:[%s1151_s2 + $0x20] sm:$0xff]  ;;  %v475_v14 = vld [vmem:[%s1151_s2 + $0x28] sm:$0xff]  ;;  %v525_v16 = vmul.f32 %v470_v2, %v470_v2 }
  0xc7   : > { %v488_v9 = vadd.f32 %v487_v6, %v486_v5  ;;  %v491_v10 = vsel %vm449_vm3, %v473_v8, 0.0  ;;  %v493_v13 = vsel %vm449_vm3, %v474_v11, 0.0  ;;  %v526_v17 = vmul.f32 %v471_v3, %v471_v3  ;;  %v476_v20 = vld [vmem:[%s1151_s2 + $0x30] sm:$0xff]  ;;  %v477_v24 = vld [vmem:[%s1151_s2 + $0x38] sm:$0xff]  ;;  %v478_v32 = vld [vmem:[%s1151_s2 + $0x40] sm:$0xff] }
  0xc8   : > { %v495_v18 = vsel %vm449_vm3, %v475_v14, 0.0  ;;  %v527_v19 = vmul.f32 %v472_v4, %v472_v4  ;;  %v528_v22 = vmul.f32 %v473_v8, %v473_v8  ;;  %v497_v23 = vsel %vm449_vm3, %v476_v20, 0.0  ;;  %v479_v38 = vld [vmem:[%s1151_s2 + $0x48] sm:$0xff]  ;;  %v480_v44 = vld [vmem:[%s1151_s2 + $0x50] sm:$0xff]  ;;  %v482_v56 = vld [vmem:[%s1151_s2 + $0x60] sm:$0xff] }
  0xc9   : > { %v490_v12 = vadd.f32 %v489_v7, %v488_v9  ;;  %v529_v26 = vmul.f32 %v474_v11, %v474_v11  ;;  %v541_v27 = vsel %vm449_vm3, %v525_v16, 0.0  ;;  %v542_v28 = vsel %vm449_vm3, %v526_v17, 0.0  ;;  %v483_v62 = vld [vmem:[%s1151_s2 + $0x68] sm:$0xff]  ;;  %v484_v4 = vld [vmem:[%s1151_s2 + $0x70] sm:$0xff] }
  0xca   : > { %v499_v29 = vsel %vm449_vm3, %v477_v24, 0.0  ;;  %v543_v30 = vadd.f32 %v542_v28, %v541_v27  ;;  %v544_v31 = vsel %vm449_vm3, %v527_v19, 0.0  ;;  %v530_v34 = vmul.f32 %v475_v14, %v475_v14  ;;  %v481_v50 = vld [vmem:[%s1151_s2 + $0x58] sm:$0xff] }
  0xcb   : > { %v492_v15 = vadd.f32 %v491_v10, %v490_v12  ;;  %v546_v35 = vsel %vm449_vm3, %v528_v22, 0.0  ;;  %v501_v36 = vsel %vm449_vm3, %v478_v32, 0.0  ;;  %v531_v40 = vmul.f32 %v476_v20, %v476_v20  ;;  %v485_v10 = vld [vmem:[%s1151_s2 + $0x78] sm:$0xff] }
  0xcc   : > { %v545_v37 = vadd.f32 %v544_v31, %v543_v30  ;;  %v548_v41 = vsel %vm449_vm3, %v529_v26, 0.0  ;;  %v503_v42 = vsel %vm449_vm3, %v479_v38, 0.0  ;;  %v532_v46 = vmul.f32 %v477_v24, %v477_v24 }
  0xcd   : > { %v494_v21 = vadd.f32 %v493_v13, %v492_v15  ;;  %v550_v47 = vsel %vm449_vm3, %v530_v34, 0.0  ;;  %v505_v48 = vsel %vm449_vm3, %v480_v44, 0.0  ;;  %v533_v52 = vmul.f32 %v478_v32, %v478_v32 }
  0xce   : > { %v547_v43 = vadd.f32 %v546_v35, %v545_v37  ;;  %v552_v53 = vsel %vm449_vm3, %v531_v40, 0.0  ;;  %v507_v54 = vsel %vm449_vm3, %v481_v50, 0.0  ;;  %v534_v58 = vmul.f32 %v479_v38, %v479_v38 }
  0xcf   : > { %v496_v25 = vadd.f32 %v495_v18, %v494_v21  ;;  %v554_v59 = vsel %vm449_vm3, %v532_v46, 0.0  ;;  %v509_v60 = vsel %vm449_vm3, %v482_v56, 0.0  ;;  %v535_v0 = vmul.f32 %v480_v44, %v480_v44 }
  0xd0   : > { %v549_v49 = vadd.f32 %v548_v41, %v547_v43  ;;  %v556_v1 = vsel %vm449_vm3, %v533_v52, 0.0  ;;  %v511_v2 = vsel %vm449_vm3, %v483_v62, 0.0  ;;  %v536_v6 = vmul.f32 %v481_v50, %v481_v50 }
  0xd1   : > { %v498_v33 = vadd.f32 %v497_v23, %v496_v25  ;;  %v558_v7 = vsel %vm449_vm3, %v534_v58, 0.0  ;;  %v513_v8 = vsel %vm449_vm3, %v484_v4, 0.0  ;;  %v537_v12 = vmul.f32 %v482_v56, %v482_v56 }
  0xd2   : > { %v551_v55 = vadd.f32 %v550_v47, %v549_v49  ;;  %v560_v13 = vsel %vm449_vm3, %v535_v0, 0.0  ;;  %v515_v14 = vsel %vm449_vm3, %v485_v10, 0.0  ;;  %v538_v17 = vmul.f32 %v483_v62, %v483_v62 }
  0xd3   : > { %v500_v39 = vadd.f32 %v499_v29, %v498_v33  ;;  %v562_v18 = vsel %vm449_vm3, %v536_v6, 0.0  ;;  %v539_v21 = vmul.f32 %v484_v4, %v484_v4  ;;  %v564_v22 = vsel %vm449_vm3, %v537_v12, 0.0 }
  0xd4   : > { %v553_v61 = vadd.f32 %v552_v53, %v551_v55  ;;  %v540_v25 = vmul.f32 %v485_v10, %v485_v10  ;;  %v566_v26 = vsel %vm449_vm3, %v538_v17, 0.0 }
  0xd5   : > { %v502_v45 = vadd.f32 %v501_v36, %v500_v39  ;;  %v568_v29 = vsel %vm449_vm3, %v539_v21, 0.0 }
  0xd6   : > { %v555_v3 = vadd.f32 %v554_v59, %v553_v61  ;;  %v570_v32 = vsel %vm449_vm3, %v540_v25, 0.0 }
  0xd7   : > { %v504_v51 = vadd.f32 %v503_v42, %v502_v45 }
  0xd8   : > { %v557_v9 = vadd.f32 %v556_v1, %v555_v3 }
  0xd9   : > { %v506_v57 = vadd.f32 %v505_v48, %v504_v51 }
  0xda   : > { %v559_v15 = vadd.f32 %v558_v7, %v557_v9 }
  0xdb   : > { %v508_v63 = vadd.f32 %v507_v54, %v506_v57 }
  0xdc   : > { %v561_v19 = vadd.f32 %v560_v13, %v559_v15 }
  0xdd   : > { %v510_v5 = vadd.f32 %v509_v60, %v508_v63 }
  0xde   : > { %v563_v23 = vadd.f32 %v562_v18, %v561_v19 }
  0xdf   : > { %v512_v11 = vadd.f32 %v511_v2, %v510_v5 }
  0xe0   : > { %v565_v27 = vadd.f32 %v564_v22, %v563_v23 }
  0xe1   : > { %v514_v16 = vadd.f32 %v513_v8, %v512_v11 }
  0xe2   : > { %v567_v30 = vadd.f32 %v566_v26, %v565_v27 }
  0xe3   : > { %v516_v20 = vadd.f32 %v515_v14, %v514_v16 }
  0xe4   : > { %v569_v33 = vadd.f32 %v568_v29, %v567_v30 }
  0xe5   : > { %v517_v24 = vrot.slane %v516_v20, 4 }
  0xe6   : > { %v571_v35 = vadd.f32 %v570_v32, %v569_v33 }
  0xe7   : > { %v518_v28 = vadd.f32 %v517_v24, %v516_v20 }
  0xe8   : > { %v572_v37 = vrot.slane %v571_v35, 4 }
  0xe9   : > { %v519_v31 = vrot.slane %v518_v28, 2 }
  0xea   : > { %v573_v39 = vadd.f32 %v572_v37, %v571_v35 }
  0xeb   : > { %v520_v34 = vadd.f32 %v519_v31, %v518_v28 }
  0xec   : > { %v574_v40 = vrot.slane %v573_v39, 2 }
  0xed   : > { %v521_v36 = vrot.slane %v520_v34, 1 }
  0xee   : > { %v575_v41 = vadd.f32 %v574_v40, %v573_v39 }
  0xef   : > { %v522_v38 = vadd.f32 %v521_v36, %v520_v34 }
  0xf0   : > { %v576_v42 = vrot.slane %v575_v41, 1 }
  0xf1   : > { %524 = vst.msk [vmem:[%s1152_s3] sm:$0x1] %vm523_vm4, %v522_v38 }
  0xf2   : > { %v577_v43 = vadd.f32 %v576_v42, %v575_v41 }
  0xf4   : > { %578 = vst.msk [vmem:[%s1153_s4] sm:$0x1] %vm523_vm4, %v577_v43 }
  0xf5 PF: > { %s15_s17 = sadd.s32 1, %s786_s17   ;;  %s1154_s15 = smov %s782_s16 }
  0xf6   : > { %p12_p7 = scmp.ge.s32.totalorder %s15_s17, 11   ;;  %s1155_s16 = smov %s1157_s18 }
  0xf8   :  { %14 = sbr.rel (!%p12_p7) target bundleno = 2 (0x2), region = 93 }

// kernel: _lambda_.6
= control target key start
LH: loop header
LB: loop body
LE: loop exit
PB: predicated region body
PF: predicated region fallthrough
CT: control target
= control target key end

     0   :  { %s593_s15 = smov 0   ;;  %s595_s16 = smov 0   ;;  %s698_s0 = inlined_call_operand.vmem [shape: f32[9,32,8], index: 0, kind: input, shape index: {}]   ;;  %s699_s1 = inlined_call_operand.vmem [shape: f32[9,8,16], index: 1, kind: input, shape index: {}]   ;;  %s700_s2 = inlined_call_operand.vmem [shape: f32[32,16], index: 2, kind: output, shape index: {0}]   ;;  %s701_s3 = inlined_call_operand.vmem [shape: f32[1,1,16], index: 3, kind: output, shape index: {1}]   ;;  %s702_s4 = inlined_call_operand.vmem [shape: f32[1,1,16], index: 4, kind: output, shape index: {2}]  }
   0x1   :  { %s597_s17 = smov 0  }
   0x2 LB: > { %s24_s18 = sadd.s32 1, %s561_s16  ;;  %p498_p0 = scmp.ge.s32.totalorder %s565_s17, 1  ;;  %s565_s17 = sphi %s597_s17, %s15_s17   ;;  %s561_s16 = sphi %s595_s16, %s704_s16   ;;  %s557_s15 = sphi %s593_s15, %s703_s15  }
   0x3   : > { %p25_p1 = scmp.ge.s32.totalorder %s24_s18, 9  ;;  %p195_p2 = scmp.lt.s32.totalorder %s565_s17, 10 }
   0x5   : > { %s706_s18 = smov (%p25_p1, %s24_s18), 0  ;;  %p196_p3 = pnand %p498_p0, %p195_p2 }
   0x6   : > { %p236_p4 = scmp.lt.s32.totalorder (!%p196_p3), %s557_s15, 8  ;;  %p502_p5 = scmp.ne.s32.totalorder (!%p196_p3), %s557_s15, 0 }
   0x7   : > { %199 = sbr.rel (%p196_p3) target bundleno = 187 (0xbb), region = 28 }
   0xc   : > { %s237_s19 = scalar_select %p236_p4, %s557_s15, 8 }
   0xd   : > { %264 = sbr.rel (%p502_p5) target bundleno = 23 (0x17), region = 32 }
   0xe   : > { %s514_s20 = sshll.u32 %s237_s19, 5  ;;  %s501_s21 = sshll.u32 %s237_s19, 3 }
   0xf   : > { %s243_s24 = scalar_lea.vmem %s698_s0, %s514_s20  ;;  %s248_s27 = scalar_lea.vmem %s699_s1, %s501_s21 }
  0x12   : > { %vm265_vm0 = vcmask 130048   ;;  %v567_v0 = vmov 0.0  }
  0x13   : > { %266 = vst.msk [vmem:[%s700_s2] sm:$0xff] %vm265_vm0, %v567_v0 }
  0x14   : > { %267 = vst.msk [vmem:[%s700_s2 + $0x8] sm:$0xff] %vm265_vm0, %v567_v0 }
  0x15   : > { %268 = vst.msk [vmem:[%s700_s2 + $0x10] sm:$0xff] %vm265_vm0, %v567_v0 }
  0x16   : > { %269 = vst.msk [vmem:[%s700_s2 + $0x18] sm:$0xff] %vm265_vm0, %v567_v0 }
  0x17 PF: > { %v278_v1 = vld [vmem:[%s248_s27] sm:$0xff]  ;;  %v276_v2 = vld [vmem:[%s243_s24 + $0x10] sm:$0xff]  ;;  %vm279_vm1 = vcmask 64512   ;;  %v277_v3 = vld [vmem:[%s243_s24 + $0x18] sm:$0xff]  ;;  %vm325_vm2 = vcmask 130048   ;;  %p507_p6 = scmp.ne.s32.totalorder %s557_s15, 8 }
  0x18   : > { %516 = vmatpush.msra.mxu2 %v278_v1  ;;  %517 = vmatpush.msra.mxu3 %v278_v1  ;;  %v274_v4 = vld [vmem:[%s243_s24] sm:$0xff]  ;;  %v275_v5 = vld [vmem:[%s243_s24 + $0x8] sm:$0xff] }
  0x19   : > { %505 = vmatmul.msk.f32.vlgmr.msra.gmra.mxu2 %vm279_vm1, %v276_v2  ;;  %506 = vmatmul.msk.f32.vlgmr.msra.gmra.mxu3 %vm279_vm1, %v277_v3 }
  0x1a   : > { %307 = vmatpush.msra.mxu0 %v278_v1  ;;  %515 = vmatpush.msra.mxu1 %v278_v1  ;;  %v270_v6 = vld [vmem:[%s700_s2] sm:$0xff] }
  0x1b   : > { %503 = vmatmul.msk.f32.vlgmr.msra.gmra.mxu0 %vm279_vm1, %v274_v4  ;;  %504 = vmatmul.msk.f32.vlgmr.msra.gmra.mxu1 %vm279_vm1, %v275_v5  ;;  %v271_v7 = vld [vmem:[%s700_s2 + $0x8] sm:$0xff] }
  0x1c   : > { %v272_v12 = vld [vmem:[%s700_s2 + $0x10] sm:$0xff] }
  0x1d   : > { %v273_v13 = vld [vmem:[%s700_s2 + $0x18] sm:$0xff] }
  0x98   : > { %v309_v8 = vpop.f32.mrf.mxu0  ;;  %v312_v9 = vpop.f32.mrf.mxu1 }
  0x99   : > { %v321_v10 = vadd.f32 %v309_v8, %v270_v6  ;;  %v322_v11 = vadd.f32 %v312_v9, %v271_v7 }
  0x9b   : > { %326 = vst.msk [vmem:[%s700_s2] sm:$0xff] %vm325_vm2, %v321_v10 }
  0x9c   : > { %327 = vst.msk [vmem:[%s700_s2 + $0x8] sm:$0xff] %vm325_vm2, %v322_v11  ;;  %v315_v14 = vpop.f32.mrf.mxu2  ;;  %v318_v15 = vpop.f32.mrf.mxu3  ;;  %333 = sbr.rel (%p507_p6) target bundleno = 187 (0xbb), region = 36 }
  0x9d   : > { %v323_v16 = vadd.f32 %v315_v14, %v272_v12  ;;  %v324_v17 = vadd.f32 %v318_v15, %v273_v13 }
  0x9f   : > { %328 = vst.msk [vmem:[%s700_s2 + $0x10] sm:$0xff] %vm325_vm2, %v323_v16 }
  0xa0   : > { %329 = vst.msk [vmem:[%s700_s2 + $0x18] sm:$0xff] %vm325_vm2, %v324_v17 }
  0xa1   : > { %vm351_vm3 = vcmask 122880  }
  0xa2   : > { %v334_v18 = vld [vmem:[%s700_s2] sm:$0xff] }
  0xa3   : > { %v335_v19 = vld [vmem:[%s700_s2 + $0x8] sm:$0xff]  ;;  %v338_v22 = vsel %vm325_vm2, %v334_v18, 0.0  ;;  %v353_v25 = vmul.f32 %v334_v18, %v334_v18 }
  0xa4   : > { %v339_v23 = vsel %vm325_vm2, %v335_v19, 0.0  ;;  %v354_v27 = vmul.f32 %v335_v19, %v335_v19 }
  0xa5   : > { %v340_v26 = vadd.f32 %v339_v23, %v338_v22  ;;  %v357_v31 = vsel %vm325_vm2, %v353_v25, 0.0 }
  0xa6   : > { %v336_v20 = vld [vmem:[%s700_s2 + $0x10] sm:$0xff]  ;;  %v358_v33 = vsel %vm325_vm2, %v354_v27, 0.0 }
  0xa7   : > { %v337_v21 = vld [vmem:[%s700_s2 + $0x18] sm:$0xff]  ;;  %v341_v24 = vsel %vm325_vm2, %v336_v20, 0.0  ;;  %v355_v28 = vmul.f32 %v336_v20, %v336_v20  ;;  %v359_v35 = vadd.f32 %v358_v33, %v357_v31 }
  0xa8   : > { %v343_v29 = vsel %vm325_vm2, %v337_v21, 0.0  ;;  %v356_v30 = vmul.f32 %v337_v21, %v337_v21  ;;  %v342_v32 = vadd.f32 %v341_v24, %v340_v26 }
  0xa9   : > { %v360_v34 = vsel %vm325_vm2, %v355_v28, 0.0 }
  0xaa   : > { %v344_v36 = vadd.f32 %v343_v29, %v342_v32  ;;  %v362_v37 = vsel %vm325_vm2, %v356_v30, 0.0  ;;  %v361_v38 = vadd.f32 %v360_v34, %v359_v35 }
  0xac   : > { %v345_v39 = vrot.slane %v344_v36, 4  ;;  %v363_v40 = vadd.f32 %v362_v37, %v361_v38 }
  0xae   : > { %v346_v41 = vadd.f32 %v345_v39, %v344_v36  ;;  %v364_v42 = vrot.slane %v363_v40, 4 }
  0xb0   : > { %v347_v43 = vrot.slane %v346_v41, 2  ;;  %v365_v44 = vadd.f32 %v364_v42, %v363_v40 }
  0xb2   : > { %v348_v45 = vadd.f32 %v347_v43, %v346_v41  ;;  %v366_v46 = vrot.slane %v365_v44, 2 }
  0xb4   : > { %v349_v47 = vrot.slane %v348_v45, 1  ;;  %v367_v48 = vadd.f32 %v366_v46, %v365_v44 }
  0xb6   : > { %v350_v49 = vadd.f32 %v349_v47, %v348_v45  ;;  %v368_v50 = vrot.slane %v367_v48, 1 }
  0xb8   : > { %352 = vst.msk [vmem:[%s701_s3] sm:$0x1] %vm351_vm3, %v350_v49  ;;  %v369_v51 = vadd.f32 %v368_v50, %v367_v48 }
  0xba   : > { %370 = vst.msk [vmem:[%s702_s4] sm:$0x1] %vm351_vm3, %v369_v51 }
  0xbb PF: > { %s15_s17 = sadd.s32 1, %s565_s17   ;;  %s703_s15 = smov %s561_s16 }
  0xbc   : > { %p12_p7 = scmp.ge.s32.totalorder %s15_s17, 11   ;;  %s704_s16 = smov %s706_s18 }
  0xbe   :  { %14 = sbr.rel (!%p12_p7) target bundleno = 2 (0x2), region = 93 }

// kernel: _lambda_.7
= control target key start
LH: loop header
LB: loop body
LE: loop exit
PB: predicated region body
PF: predicated region fallthrough
CT: control target
= control target key end

     0   :  { %s137_s0 = inlined_call_operand.vmem [shape: f32[32,16], index: 0, kind: input, shape index: {}]   ;;  %s138_s1 = inlined_call_operand.vmem [shape: f32[1,16], index: 1, kind: input, shape index: {}]   ;;  %s139_s2 = inlined_call_operand.vmem [shape: f32[1,16], index: 2, kind: input, shape index: {}]   ;;  %s140_s3 = inlined_call_operand.hbm [shape: f32[32,16], index: 3, kind: output, shape index: {}]  }
   0x1   :  { %v15_v0 = vld [vmem:[%s137_s0] sm:$0xff]  ;;  %v16_v3 = vld [vmem:[%s137_s0 + $0x8] sm:$0xff]  ;;  %v17_v6 = vld [vmem:[%s137_s0 + $0x10] sm:$0xff] }
   0x2   :  { %v65_v1 = vld [vmem:[%s138_s1] ss:$0 sm:$0xff]  ;;  %v18_v7 = vld [vmem:[%s137_s0 + $0x18] sm:$0xff] }
   0x3   :  { %v66_v2 = vld [vmem:[%s139_s2] ss:$0 sm:$0xff]  ;;  %v23_v4 = vmul.f32 %v65_v1, %v15_v0  ;;  %v24_v5 = vmul.f32 %v65_v1, %v16_v3 }
   0x4   :  { %8 = vsyncpa [#allocation3], 0  ;;  %v25_v8 = vmul.f32 %v65_v1, %v17_v6  ;;  %v26_v9 = vmul.f32 %v65_v1, %v18_v7  ;;  %vm39_vm0 = vcmask 130048   ;;  %s93_s1 = smov [#allocation2]   ;;  %s50_s26 = sshll.u32 %s140_s3, 4  ;;  %s51_s26 = int_to_ptr.hbm [resolvable:$true] %s50_s26 }
   0x5   :  { %v31_v10 = vadd.f32 %v66_v2, %v23_v4  ;;  %v32_v11 = vadd.f32 %v66_v2, %v24_v5  ;;  %s48_s2 = sshll.u32 %s93_s1, 4  ;;  %s94_s0 = smov 128   ;;  %s49_s2 = int_to_ptr.vmem [resolvable:$true] %s48_s2 }
   0x6   :  { %v33_v12 = vadd.f32 %v66_v2, %v25_v8  ;;  %v34_v13 = vadd.f32 %v66_v2, %v26_v9  ;;  %s95_s27 = smov 8  }
   0x7   :  { %v35_v14 = vmax.f32 %v31_v10, 0.0  ;;  %v36_v15 = vmax.f32 %v32_v11, 0.0 }
   0x8   :  { %v37_v16 = vmax.f32 %v33_v12, 0.0  ;;  %v38_v17 = vmax.f32 %v34_v13, 0.0 }
   0x9   :  { %40 = vst.msk [vmem:[#allocation2] sm:$0xff] %vm39_vm0, %v35_v14 }
   0xa   :  { %41 = vst.msk [vmem:[#allocation2 + $0x8] sm:$0xff] %vm39_vm0, %v36_v15 }
   0xb   :  { %42 = vst.msk [vmem:[#allocation2 + $0x10] sm:$0xff] %vm39_vm0, %v37_v16 }
   0xc   :  { %43 = vst.msk [vmem:[#allocation2 + $0x18] sm:$0xff] %vm39_vm0, %v38_v17 }
   0xd   :  { %56 = dma.vmem_to_hbm [thread:$0]  %s49_s2, 512, %s51_s26, [#allocation3], %s94_s0, %s94_s0, %s95_s27  }
   0xe   :  { %91 = dma.done.wait [#allocation3], 512  }
   0xf   :  { %92 = vsyncadd [#allocation3], 4294966784 }
  0x10   :  { %61 = vsyncpa [#allocation3], 1 }

</bundles_post_ra>
